<compile_context>
chip_gen: v6e
topology: v6e:2x2x1
jax: 0.10.0
libtpu: 0.0.40
codegen_flags: <defaults>
</compile_context>

<pallas_src>
import math

import jax
import jax.numpy as jnp
from jax.experimental import pallas as pl
from jax.experimental.pallas import tpu as pltpu


def _vstack_kernel(lo_ref, up_ref, out_ref):
    # out block is (2, tm, fc): slot 0 <- lower tile, slot 1 <- upper tile.
    out_ref[0, :, :] = lo_ref[...]
    out_ref[1, :, :] = up_ref[...]


def _round_up(x, mult):
    return (x + mult - 1) // mult * mult


def _choose_tiles(m, f, itemsize):
    """Pick (row tile, lane tile) for the copy.

    Per grid step the pipeline keeps ~2x (lower tile + upper tile + (2,tm,fc)
    output tile) resident -> ~8 * tm * fc * itemsize bytes.  Budget 12 MiB:
    safely under v5e's 16 MiB scoped-VMEM default and v6e/v7x's 32 MiB."""
    sub = max(8, 32 // itemsize)          # packed sublane multiple per dtype
    budget = 12 * 1024 * 1024

    # Lane (column) tile: full width if small, else a multiple of 128,
    # preferring one that divides f so every store is unmasked/lane-dense.
    fc_target = 2048
    if f <= fc_target:
        fc = f
    else:
        fc = fc_target
        for cand in range(fc_target, 127, -128):
            if f % cand == 0:
                fc = cand
                break

    bytes_per_row = 8 * fc * itemsize
    tm_max = max(sub, (budget // bytes_per_row) // sub * sub)
    tm = m if m <= tm_max else tm_max

    # v7x megacore: make sure there are >= 2 parallel blocks when possible.
    n_blocks = pl.cdiv(m, tm) * pl.cdiv(f, fc)
    if n_blocks < 2:
        if m >= 2 * sub:
            tm = _round_up((m + 1) // 2, sub)
        elif fc >= 256:
            fc = max(128, (fc // 2) // 128 * 128)
    return tm, fc


@jax.jit
def _stack_pair(lower, upper):
    """vstack two same-shape (>=2-D) arrays with a single fused Pallas copy."""
    assert lower.shape == upper.shape and lower.dtype == upper.dtype
    m = lower.shape[0]
    f = math.prod(lower.shape[1:])
    itemsize = jnp.dtype(lower.dtype).itemsize

    # Flatten trailing dims so the feature width sits on the lane axis.
    # (Contiguous reshape: free metadata op, no HBM traffic.)
    lo2 = lower.reshape(m, f)
    up2 = upper.reshape(m, f)

    tm, fc = _choose_tiles(m, f, itemsize)
    grid = (pl.cdiv(m, tm), pl.cdiv(f, fc))

    stacked = pl.pallas_call(
        _vstack_kernel,
        out_shape=jax.ShapeDtypeStruct((2, m, f), lo2.dtype),
        grid_spec=pltpu.PrefetchScalarGridSpec(
            num_scalar_prefetch=0,
            grid=grid,
            in_specs=[
                pl.BlockSpec((tm, fc), lambda i, j: (i, j)),   # lower tile
                pl.BlockSpec((tm, fc), lambda i, j: (i, j)),   # upper tile
            ],
            out_specs=pl.BlockSpec((2, tm, fc), lambda i, j: (0, i, j)),
        ),
        compiler_params=pltpu.CompilerParams(
            dimension_semantics=("parallel", "parallel")),
        cost_estimate=pl.CostEstimate(
            flops=0, transcendentals=0,
            bytes_accessed=4 * m * f * itemsize),   # read 2mf + write 2mf
    )(lo2, up2)

    # (2, m, f) is bit-identical (row-major) to vstack order; reshape is free.
    return stacked.reshape((2 * m,) + lower.shape[1:])


def input_transformer(bounds):
    """bounds[0] = lower, bounds[1] = upper.  Returns vstack([lower, upper]).

    Accepts either one stacked array of shape (2, N, ...) or a tuple/list of
    two same-shape arrays."""
    if hasattr(bounds, "shape") and hasattr(bounds, "dtype"):
        arr = jnp.asarray(bounds)
        if arr.ndim >= 2 and arr.shape[0] == 2:
            # FAST PATH: vstack of the two halves of a contiguous (2, N, ...)
            # array is exactly its (2N, ...) reshape -> zero HBM traffic.
            if arr.ndim == 2:
                return arr          # rows already stacked: (2, n)
            return arr.reshape((2 * arr.shape[1],) + arr.shape[2:])
        lower, upper = arr[0], arr[1]   # uncommon: leading dim != 2
    else:
        lower, upper = bounds[0], bounds[1]

    lower = jnp.asarray(lower)
    upper = jnp.asarray(upper)
    if lower.ndim < 2:                  # torch.vstack promotes 1-D/0-D to rows
        lower = jnp.atleast_2d(lower)
        upper = jnp.atleast_2d(upper)
    return _stack_pair(lower, upper)


if __name__ == "__main__":
    # Deterministic synthetic inputs (no checkpoint / file I/O).
    key = jax.random.PRNGKey(0)
    k_c, k_r = jax.random.split(key)

    N, C, H, W = 2, 4, 16, 16
    center = jax.random.normal(k_c, (N, C, H, W), jnp.float32)
    radius = 0.05 * jnp.abs(jax.random.normal(k_r, (N, C, H, W), jnp.float32))
    lower = center - radius
    upper = center + radius
    ref = jnp.concatenate([lower, upper], axis=0)

    # Path 1: (lower, upper) given as two separate arrays -> Pallas copy kernel.
    out = input_transformer((lower, upper))
    out = jax.block_until_ready(out)
    assert out.shape == ref.shape == (2 * N, C, H, W), (out.shape, ref.shape)
    assert bool(jnp.array_equal(out, ref)), float(jnp.max(jnp.abs(out - ref)))
    # Interval soundness of the stacked result: lower half <= upper half.
    assert bool(jnp.all(out[:N] <= out[N:]))

    # Path 2: already-stacked (2, N, C, H, W) array -> free reshape fast path.
    bounds_stacked = jnp.stack([lower, upper], axis=0)
    out2 = jax.block_until_ready(input_transformer(bounds_stacked))
    assert bool(jnp.array_equal(out2, ref))

    # TODO(synk): the module also caches `self.bounds` and defines __repr__;
    # both are framework bookkeeping with no compute, so not translated.
    print("KERNEL_OK")
</pallas_src>

<mosaic_0001>
module attributes {stable_mosaic.version = 11 : i64} {
  func.func @_vstack_kernel(%arg0: i32, %arg1: i32, %arg2: memref<2x512xf32, #tpu.memory_space<vmem>>, %arg3: memref<2x512xf32, #tpu.memory_space<vmem>>, %arg4: memref<2x2x512xf32, #tpu.memory_space<vmem>>) attributes {dimension_semantics = [#tpu.dimension_semantics<parallel>, #tpu.dimension_semantics<parallel>], iteration_bounds = array<i64: 1, 2>, scalar_prefetch = 0 : i64, scratch_operands = 0 : i64, tpu.core_type = #tpu.core_type<tc>, window_params = [{transform_indices = @transform_0, window_bounds = array<i64: 2, 512>}, {transform_indices = @transform_1, window_bounds = array<i64: 2, 512>}, {transform_indices = @transform_2, window_bounds = array<i64: 2, 2, 512>}]} {
    %c0 = arith.constant 0 : index
    %c0_0 = arith.constant 0 : index
    %0 = vector.load %arg2[%c0, %c0_0] : memref<2x512xf32, #tpu.memory_space<vmem>>, vector<2x512xf32>
    %c0_1 = arith.constant 0 : index
    %c0_2 = arith.constant 0 : index
    %c0_3 = arith.constant 0 : index
    %1 = vector.load %arg4[%c0_1, %c0_2, %c0_3] : memref<2x2x512xf32, #tpu.memory_space<vmem>>, vector<1x2x512xf32>
    %2 = vector.shape_cast %1 : vector<1x2x512xf32> to vector<2x512xf32>
    %3 = vector.shape_cast %0 : vector<2x512xf32> to vector<1x2x512xf32>
    tpu.vector_store %arg4[%c0_1, %c0_2, %c0_3], %3 {strides = array<i32>} : memref<2x2x512xf32, #tpu.memory_space<vmem>>, vector<1x2x512xf32>,
    %c0_4 = arith.constant 0 : index
    %c0_5 = arith.constant 0 : index
    %4 = vector.load %arg3[%c0_4, %c0_5] : memref<2x512xf32, #tpu.memory_space<vmem>>, vector<2x512xf32>
    %c1 = arith.constant 1 : index
    %c0_6 = arith.constant 0 : index
    %c0_7 = arith.constant 0 : index
    %5 = vector.load %arg4[%c1, %c0_6, %c0_7] : memref<2x2x512xf32, #tpu.memory_space<vmem>>, vector<1x2x512xf32>
    %6 = vector.shape_cast %5 : vector<1x2x512xf32> to vector<2x512xf32>
    %7 = vector.shape_cast %4 : vector<2x512xf32> to vector<1x2x512xf32>
    tpu.vector_store %arg4[%c1, %c0_6, %c0_7], %7 {strides = array<i32>} : memref<2x2x512xf32, #tpu.memory_space<vmem>>, vector<1x2x512xf32>,
    return
  }
  func.func @transform_0(%arg0: i32, %arg1: i32) -> (i32, i32) {
    %c0_i32 = arith.constant 0 : i32
    return %arg0, %arg1 : i32, i32
  }
  func.func @transform_1(%arg0: i32, %arg1: i32) -> (i32, i32) {
    %c0_i32 = arith.constant 0 : i32
    return %arg0, %arg1 : i32, i32
  }
  func.func @transform_2(%arg0: i32, %arg1: i32) -> (i32, i32, i32) {
    %c0_i32 = arith.constant 0 : i32
    %c0_i32_0 = arith.constant 0 : i32
    return %c0_i32, %arg0, %arg1 : i32, i32, i32
  }
}

</mosaic_0001>

<bundles_post_ra>
// kernel: _stack_pair.1
= control target key start
LH: loop header
LB: loop body
LE: loop exit
PB: predicated region body
PF: predicated region fallthrough
CT: control target
= control target key end

     0   :  { %s457_s9 = smov 0   ;;  %s459_s10 = smov 0   ;;  %s522_s0 = inlined_call_operand.vmem [shape: f32[2,1024], index: 0, kind: input, shape index: {}]   ;;  %s523_s1 = inlined_call_operand.vmem [shape: f32[2,1024], index: 1, kind: input, shape index: {}]   ;;  %s524_s2 = inlined_call_operand.vmem [shape: f32[2,2,1024], index: 2, kind: output, shape index: {}]  }
   0x1   :  { %s461_s11 = smov 0   ;;  %s463_s12 = smov 0  }
   0x2   :  { %s465_s13 = smov 0  }
   0x3 LB: > { %s345_s14 = sadd.s32 4294967295, %s440_s13   ;;  %s21_s15 = sadd.s32 1, %s436_s12  ;;  %s440_s13 = sphi %s465_s13, %s12_s13   ;;  %s436_s12 = sphi %s463_s12, %s529_s12   ;;  %s432_s11 = sphi %s461_s11, %s528_s11   ;;  %s428_s10 = sphi %s459_s10, %s527_s10   ;;  %s424_s9 = sphi %s457_s9, %s526_s9  }
   0x4   : > { %p22_p0 = scmp.ge.s32.totalorder %s21_s15, 2  ;;  %s89_s16 = sadd.s32 1, %s428_s10 }
   0x5   : > { %p99_p1 = scmp.ne.s32.totalorder %s428_s10, %s424_s9  ;;  %p100_p2 = scmp.eq.s32.totalorder %s345_s14, 1 }
   0x6   : > { %s531_s15 = smov (%p22_p0, %s21_s15), 0  ;;  %p349_p4 = scmp.ge.s32.totalorder %s440_s13, 1 }
   0x7   : > { %p486_p3 = por %p100_p2, %p99_p1  ;;  %s85_s18 = ssub.s32 %s436_s12, %s531_s15 }
   0x8   : > { %p150_p5 = scmp.lt.s32.totalorder %s440_s13, 3  ;;  %p87_p6 = scmp.eq.s32.totalorder %s85_s18, 0 }
   0xa   : > { %p151_p7 = pnand %p349_p4, %p150_p5 }
   0xb   : > { %s90_s19 = scalar_select %p87_p6, %s428_s10, %s89_s16  }
   0xc   : > { %154 = sbr.rel (%p151_p7) target bundleno = 31 (0x1f), region = 28  ;;  %s181_s20 = sand.u32 (!%p151_p7), 1, %s424_s9  }
   0xd   : > { %s351_s21 = sshll.u32 (!%p151_p7), %s432_s11, 2  ;;  %s350_s22 = sshll.u32 (!%p151_p7), %s181_s20, 4 }
   0xe   : > { %p187_p8 = scmp.lt.s32.totalorder (!%p151_p7), %s351_s21, 7  ;;  %s183_s30 = scalar_lea.vmem (!%p151_p7), [#allocation2], %s350_s22 }
  0x11   : > { %s533_s21 = smov (!%p187_p8, %s351_s21), 7  ;;  %s361_s3 = sshll.u32 (%p486_p3), %s432_s11, 3 }
  0x12   : > { %s352_s23 = sshll.u32 %s533_s21, 1  ;;  %216 = sbr.rel (!%p486_p3) target bundleno = 31 (0x1f), region = 32 }
  0x13   : > { %s192_s26 = scalar_lea.vmem %s522_s0, %s352_s23  ;;  %s202_s29 = scalar_lea.vmem %s523_s1, %s352_s23 }
  0x14   : > { %v205_v0 = vld [vmem:[%s192_s26] sm:$0xff]  ;;  %s221_s6 = scalar_lea.vmem (%p486_p3), %s524_s2, %s361_s3 }
  0x15   : > { %v207_v1 = vld [vmem:[%s202_s29] sm:$0xff]  ;;  %206 = vst [vmem:[%s183_s30] sm:$0xff] %v205_v0 }
  0x16   : > { %355 = vst [vmem:[%s183_s30 + $0x8] sm:$0xff] %v207_v1 }
  0x1c   : > { %v252_v2 = vld [vmem:[%s183_s30] sm:$0xff] }
  0x1d   : > { %v254_v3 = vld [vmem:[%s183_s30 + $0x8] sm:$0xff]  ;;  %253 = vst [vmem:[%s221_s6] sm:$0xff] %v252_v2 }
  0x1e   : > { %255 = vst [vmem:[%s221_s6 + $0x10] sm:$0xff] %v254_v3 }
  0x1f PF: > { %s12_s13 = sadd.s32 1, %s440_s13   ;;  %s526_s9 = smov %s428_s10 }
  0x20   : > { %p9_p9 = scmp.ge.s32.totalorder %s12_s13, 4   ;;  %s527_s10 = smov %s90_s19 }
  0x21   : > { %s528_s11 = smov %s436_s12  ;;  %s529_s12 = smov %s531_s15 }
  0x22   :  { %11 = sbr.rel (!%p9_p9) target bundleno = 3 (0x3), region = 100 }

</bundles_post_ra>
